<compile_context>
chip_gen: v7x
topology: tpu7x:2x2x1
jax: 0.10.0
libtpu: 0.0.40
codegen_flags: <defaults>
</compile_context>

<pallas_src>
import jax
import jax.numpy as jnp
from jax.experimental import pallas as pl
from jax.experimental.pallas import tpu as pltpu
import numpy as np

LANE = 128


def _round_up(x, m):
    return (x + m - 1) // m * m


def _default_elementwise_dtype():
    """bf16 elementwise on v6e/v7x (native bf16 VPU); f32 on v5e and older."""
    try:
        kind = jax.devices()[0].device_kind.lower()
    except Exception:
        kind = ""
    for old in ("v2", "v3", "v4", "v5"):
        if old in kind:
            return jnp.float32
    return jnp.bfloat16


# ---------------------------------------------------------------------------
# Pallas kernel: fused MLP composition + projection + L2 normalize
# ---------------------------------------------------------------------------
def _make_mlp_encoder_kernel(ew_dtype):
    """ew_dtype: dtype for the bias-add / LeakyReLU chain (bf16 on v6e/v7x,
    f32 on v5e).  Matmuls always use bf16 operands + f32 accumulation."""

    def kernel(cat_ref, w1_ref, b1_ref, w2_ref, b2_ref, w3_ref, b3_ref,
               wp_ref, bp_ref, out_ref):
        f32 = jnp.float32

        def layer(h, w_ref, b_ref):
            d = jnp.dot(h, w_ref[...], preferred_element_type=f32)
            d = d.astype(ew_dtype) + b_ref[...].astype(ew_dtype)
            return jnp.maximum(d, 0.1 * d)               # LeakyReLU(0.1)

        h = layer(cat_ref[...], w1_ref, b1_ref)                   # [Bt, 3W]
        h = layer(h.astype(jnp.bfloat16), w2_ref, b2_ref)          # [Bt, 3W/2]
        h = layer(h.astype(jnp.bfloat16), w3_ref, b3_ref)          # [Bt, W]

        # Projection + L2 norm; keep the reduction in f32, rsqrt on the EUP.
        o = (jnp.dot(h.astype(jnp.bfloat16), wp_ref[...],
                     preferred_element_type=f32) + bp_ref[...])
        ssq = jnp.sum(o * o, axis=1, keepdims=True)
        out_ref[...] = (o * jax.lax.rsqrt(ssq + 1e-12)).astype(out_ref.dtype)

    return kernel


def mlp_encoder_text_pallas(cat, params, *, trim=True, elementwise_dtype=None):
    """cat: [B, 2*word_dim] bf16 concatenated (attribute, object) embeddings.

    trim=True slices back to [B, embed_size] (PyTorch semantics); trim=False
    returns the lane-padded [B_pad, Ep] slab (padded columns are exact zeros)
    so downstream consumers can skip the extra XLA slice copy.
    """
    B, twoW = cat.shape
    E = params["embed_size"]
    H1p = params["b1"].shape[1]
    H2p = params["b2"].shape[1]
    H3p = params["b3"].shape[1]
    Ep = params["bp"].shape[1]

    if elementwise_dtype is None:
        elementwise_dtype = _default_elementwise_dtype()

    # ---- batch tiling -------------------------------------------------------
    B_pad = _round_up(B, 16)
    B_TILE = min(B_pad, 2048)
    # Keep >=2 grid steps when there is enough work so v7x's two TensorCores
    # both get a share of the "parallel" batch axis.
    if B_pad // B_TILE < 2 and B_pad >= 256:
        B_pad = _round_up(B_pad, 32)
        B_TILE = B_pad // 2
    B_pad = _round_up(B_pad, B_TILE)
    if B_pad != B:
        cat = jnp.pad(cat, ((0, B_pad - B), (0, 0)))

    grid = (B_pad // B_TILE,)

    def batch_spec(n_cols):
        # batch-tiled activation / output blocks
        return pl.BlockSpec((B_TILE, n_cols), lambda i: (i, 0))

    def resident_spec(arr):
        # full-array block, constant index -> loaded once, VMEM-resident
        return pl.BlockSpec(arr.shape, lambda i: (0, 0))

    weights = (params["w1"], params["b1"], params["w2"], params["b2"],
               params["w3"], params["b3"], params["wp"], params["bp"])
    operands = (cat,) + weights
    in_specs = [batch_spec(twoW)] + [resident_spec(a) for a in weights]

    flops = 2 * B_pad * (twoW * H1p + H1p * H2p + H2p * H3p + H3p * Ep)
    bytes_accessed = (cat.size * cat.dtype.itemsize
                      + sum(int(np.prod(a.shape)) * a.dtype.itemsize
                            for a in weights)
                      + B_pad * Ep * 2)                    # bf16 output
    cost = pl.CostEstimate(flops=int(flops),
                           transcendentals=int(B_pad),
                           bytes_accessed=int(bytes_accessed))

    out = pl.pallas_call(
        _make_mlp_encoder_kernel(elementwise_dtype),
        out_shape=jax.ShapeDtypeStruct((B_pad, Ep), jnp.bfloat16),
        grid=grid,
        in_specs=in_specs,
        out_specs=batch_spec(Ep),
        compiler_params=pltpu.CompilerParams(
            dimension_semantics=("parallel",),
            vmem_limit_bytes=48 * 1024 * 1024),
        cost_estimate=cost,
    )(*operands)

    if trim:
        return out[:B, :E]
    return out


# ---------------------------------------------------------------------------
# Parameter construction (mirrors the PyTorch __init__ / init_weights)
# ---------------------------------------------------------------------------
def init_params(key, vocab_size, word_dim, embed_size):
    assert word_dim % 2 == 0, "word_dim must be even so 3/2*word_dim is an int"
    W = word_dim
    H1, H2, H3, E = 3 * W, (3 * W) // 2, W, embed_size
    H1p, H2p, H3p, Ep = (_round_up(d, LANE) for d in (H1, H2, H3, E))

    keys = jax.random.split(key, 5)

    def xavier(k, fan_in, fan_out):
        # init_weights: uniform(-r, r), r = sqrt(6)/sqrt(in+out); bias = 0
        r = np.sqrt(6.0) / np.sqrt(fan_in + fan_out)
        return jax.random.uniform(k, (fan_in, fan_out), jnp.float32, -r, r)

    def pad_to(w, rows, cols):
        return jnp.pad(w, ((0, rows - w.shape[0]), (0, cols - w.shape[1])))

    # bf16 table: halves gather bytes; the kernel consumes bf16 activations.
    embed = jax.random.uniform(keys[0], (vocab_size, W), jnp.float32,
                               -0.1, 0.1).astype(jnp.bfloat16)

    # layer1 (2W -> 3W), single fused weight (no att/obj split needed).
    w1 = pad_to(xavier(keys[1], 2 * W, H1), 2 * W, H1p).astype(jnp.bfloat16)
    b1 = jnp.zeros((1, H1p), jnp.float32)
    w2 = pad_to(xavier(keys[2], H1, H2), H1p, H2p).astype(jnp.bfloat16)
    b2 = jnp.zeros((1, H2p), jnp.float32)
    w3 = pad_to(xavier(keys[3], H2, H3), H2p, H3p).astype(jnp.bfloat16)
    b3 = jnp.zeros((1, H3p), jnp.float32)
    wp = pad_to(xavier(keys[4], H3, E), H3p, Ep).astype(jnp.bfloat16)
    bp = jnp.zeros((1, Ep), jnp.float32)

    return {"embed": embed,
            "w1": w1, "b1": b1, "w2": w2, "b2": b2,
            "w3": w3, "b3": b3, "wp": wp, "bp": bp,
            "word_dim": W, "embed_size": E}


def mlp_encoder_text_forward(x, params, lengths=None, *, trim=True):
    """x: int32 [B, 2] word indices (attribute, object). `lengths` unused."""
    # TODO(synk): embedding row gather stays in plain JAX/XLA (see header).
    B = x.shape[0]
    cat = params["embed"][x].reshape(B, 2 * params["word_dim"])   # [B, 2W] bf16
    return mlp_encoder_text_pallas(cat, params, trim=trim)


# ---------------------------------------------------------------------------
# Reference (pure JAX, same numerics as the kernel) for sanity checking
# ---------------------------------------------------------------------------
def reference_forward(x, params, elementwise_dtype=None):
    if elementwise_dtype is None:
        elementwise_dtype = _default_elementwise_dtype()
    f32 = jnp.float32

    def layer(h, w, b):
        d = jnp.dot(h, w, preferred_element_type=f32)
        d = d.astype(elementwise_dtype) + b.astype(elementwise_dtype)
        return jnp.maximum(d, 0.1 * d)

    cat = params["embed"][x].reshape(x.shape[0], -1)              # [B, 2W] bf16
    h = layer(cat, params["w1"], params["b1"])
    h = layer(h.astype(jnp.bfloat16), params["w2"], params["b2"])
    h = layer(h.astype(jnp.bfloat16), params["w3"], params["b3"])
    o = jnp.dot(h.astype(jnp.bfloat16), params["wp"],
                preferred_element_type=f32) + params["bp"]
    o = o * jax.lax.rsqrt(jnp.sum(o * o, axis=1, keepdims=True) + 1e-12)
    return o[:, :params["embed_size"]].astype(jnp.bfloat16)


if __name__ == "__main__":
    vocab_size = 100
    word_dim = 32          # layer dims: (32+32) -> 96 -> 48 -> 32 -> embed
    embed_size = 64
    batch = 8

    key = jax.random.PRNGKey(0)
    pkey, xkey = jax.random.split(key)
    params = init_params(pkey, vocab_size, word_dim, embed_size)

    # x: [B, 2] word indices (attribute, object); lengths unused by forward
    x = jax.random.randint(xkey, (batch, 2), 0, vocab_size, dtype=jnp.int32)

    out = mlp_encoder_text_forward(x, params)
    out = jax.block_until_ready(out)
    assert out.shape == (batch, embed_size)

    out_f32 = np.asarray(out.astype(jnp.float32))
    ref_f32 = np.asarray(reference_forward(x, params).astype(jnp.float32))
    np.testing.assert_allclose(out_f32, ref_f32, rtol=3e-2, atol=3e-2)
    # rows should be unit-norm after l2norm (bf16 output rounding tolerance)
    np.testing.assert_allclose(np.linalg.norm(out_f32, axis=1),
                               np.ones(batch), rtol=2e-2, atol=2e-2)

    print("KERNEL_OK")
</pallas_src>

<mosaic_0001>
module attributes {stable_mosaic.version = 11 : i64} {
  func.func @kernel(%arg0: i32, %arg1: memref<16x64xbf16, #tpu.memory_space<vmem>>, %arg2: memref<64x128xbf16, #tpu.memory_space<vmem>>, %arg3: memref<1x128xf32, #tpu.memory_space<vmem>>, %arg4: memref<128x128xbf16, #tpu.memory_space<vmem>>, %arg5: memref<1x128xf32, #tpu.memory_space<vmem>>, %arg6: memref<128x128xbf16, #tpu.memory_space<vmem>>, %arg7: memref<1x128xf32, #tpu.memory_space<vmem>>, %arg8: memref<128x128xbf16, #tpu.memory_space<vmem>>, %arg9: memref<1x128xf32, #tpu.memory_space<vmem>>, %arg10: memref<16x128xbf16, #tpu.memory_space<vmem>>) attributes {dimension_semantics = [#tpu.dimension_semantics<parallel>], iteration_bounds = array<i64: 1>, scalar_prefetch = 0 : i64, scratch_operands = 0 : i64, tpu.core_type = #tpu.core_type<tc>, window_params = [{transform_indices = @transform_0, window_bounds = array<i64: 16, 64>}, {pipeline_mode = #tpu.pipeline_mode<synchronous>, transform_indices = @transform_1, window_bounds = array<i64: 64, 128>}, {pipeline_mode = #tpu.pipeline_mode<synchronous>, transform_indices = @transform_2, window_bounds = array<i64: 1, 128>}, {pipeline_mode = #tpu.pipeline_mode<synchronous>, transform_indices = @transform_3, window_bounds = array<i64: 128, 128>}, {pipeline_mode = #tpu.pipeline_mode<synchronous>, transform_indices = @transform_4, window_bounds = array<i64: 1, 128>}, {pipeline_mode = #tpu.pipeline_mode<synchronous>, transform_indices = @transform_5, window_bounds = array<i64: 128, 128>}, {pipeline_mode = #tpu.pipeline_mode<synchronous>, transform_indices = @transform_6, window_bounds = array<i64: 1, 128>}, {pipeline_mode = #tpu.pipeline_mode<synchronous>, transform_indices = @transform_7, window_bounds = array<i64: 128, 128>}, {pipeline_mode = #tpu.pipeline_mode<synchronous>, transform_indices = @transform_8, window_bounds = array<i64: 1, 128>}, {transform_indices = @transform_9, window_bounds = array<i64: 16, 128>}]} {
    %c0 = arith.constant 0 : index
    %c0_0 = arith.constant 0 : index
    %0 = vector.load %arg1[%c0, %c0_0] : memref<16x64xbf16, #tpu.memory_space<vmem>>, vector<16x64xbf16>
    %c0_1 = arith.constant 0 : index
    %c0_2 = arith.constant 0 : index
    %1 = vector.load %arg2[%c0_1, %c0_2] : memref<64x128xbf16, #tpu.memory_space<vmem>>, vector<64x128xbf16>
    %cst = arith.constant dense<0.000000e+00> : vector<16x128xf32>
    %2 = tpu.matmul %0, %1, %cst {dimension_numbers = #tpu.dot_dimension_numbers<[1], [0], [0], [1], [0, 0, 1, 1], [], []>} : vector<16x64xbf16>, vector<64x128xbf16>, vector<16x128xf32> -> vector<16x128xf32>
    %3 = arith.truncf %2 : vector<16x128xf32> to vector<16x128xbf16>
    %c0_3 = arith.constant 0 : index
    %c0_4 = arith.constant 0 : index
    %4 = vector.load %arg3[%c0_3, %c0_4] : memref<1x128xf32, #tpu.memory_space<vmem>>, vector<1x128xf32>
    %5 = arith.truncf %4 : vector<1x128xf32> to vector<1x128xbf16>
    %6 = vector.broadcast %5 : vector<1x128xbf16> to vector<16x128xbf16>
    %7 = arith.addf %3, %6 : vector<16x128xbf16>
    %cst_5 = arith.constant 1.000980e-01 : bf16
    %8 = vector.broadcast %cst_5 : bf16 to vector<16x128xbf16>
    %9 = arith.mulf %8, %7 : vector<16x128xbf16>
    %10 = arith.maximumf %7, %9 : vector<16x128xbf16>
    %c0_6 = arith.constant 0 : index
    %c0_7 = arith.constant 0 : index
    %11 = vector.load %arg4[%c0_6, %c0_7] : memref<128x128xbf16, #tpu.memory_space<vmem>>, vector<128x128xbf16>
    %cst_8 = arith.constant dense<0.000000e+00> : vector<16x128xf32>
    %12 = tpu.matmul %10, %11, %cst_8 {dimension_numbers = #tpu.dot_dimension_numbers<[1], [0], [0], [1], [0, 0, 1, 1], [], []>} : vector<16x128xbf16>, vector<128x128xbf16>, vector<16x128xf32> -> vector<16x128xf32>
    %13 = arith.truncf %12 : vector<16x128xf32> to vector<16x128xbf16>
    %c0_9 = arith.constant 0 : index
    %c0_10 = arith.constant 0 : index
    %14 = vector.load %arg5[%c0_9, %c0_10] : memref<1x128xf32, #tpu.memory_space<vmem>>, vector<1x128xf32>
    %15 = arith.truncf %14 : vector<1x128xf32> to vector<1x128xbf16>
    %16 = vector.broadcast %15 : vector<1x128xbf16> to vector<16x128xbf16>
    %17 = arith.addf %13, %16 : vector<16x128xbf16>
    %cst_11 = arith.constant 1.000980e-01 : bf16
    %18 = vector.broadcast %cst_11 : bf16 to vector<16x128xbf16>
    %19 = arith.mulf %18, %17 : vector<16x128xbf16>
    %20 = arith.maximumf %17, %19 : vector<16x128xbf16>
    %c0_12 = arith.constant 0 : index
    %c0_13 = arith.constant 0 : index
    %21 = vector.load %arg6[%c0_12, %c0_13] : memref<128x128xbf16, #tpu.memory_space<vmem>>, vector<128x128xbf16>
    %cst_14 = arith.constant dense<0.000000e+00> : vector<16x128xf32>
    %22 = tpu.matmul %20, %21, %cst_14 {dimension_numbers = #tpu.dot_dimension_numbers<[1], [0], [0], [1], [0, 0, 1, 1], [], []>} : vector<16x128xbf16>, vector<128x128xbf16>, vector<16x128xf32> -> vector<16x128xf32>
    %23 = arith.truncf %22 : vector<16x128xf32> to vector<16x128xbf16>
    %c0_15 = arith.constant 0 : index
    %c0_16 = arith.constant 0 : index
    %24 = vector.load %arg7[%c0_15, %c0_16] : memref<1x128xf32, #tpu.memory_space<vmem>>, vector<1x128xf32>
    %25 = arith.truncf %24 : vector<1x128xf32> to vector<1x128xbf16>
    %26 = vector.broadcast %25 : vector<1x128xbf16> to vector<16x128xbf16>
    %27 = arith.addf %23, %26 : vector<16x128xbf16>
    %cst_17 = arith.constant 1.000980e-01 : bf16
    %28 = vector.broadcast %cst_17 : bf16 to vector<16x128xbf16>
    %29 = arith.mulf %28, %27 : vector<16x128xbf16>
    %30 = arith.maximumf %27, %29 : vector<16x128xbf16>
    %c0_18 = arith.constant 0 : index
    %c0_19 = arith.constant 0 : index
    %31 = vector.load %arg8[%c0_18, %c0_19] : memref<128x128xbf16, #tpu.memory_space<vmem>>, vector<128x128xbf16>
    %cst_20 = arith.constant dense<0.000000e+00> : vector<16x128xf32>
    %32 = tpu.matmul %30, %31, %cst_20 {dimension_numbers = #tpu.dot_dimension_numbers<[1], [0], [0], [1], [0, 0, 1, 1], [], []>} : vector<16x128xbf16>, vector<128x128xbf16>, vector<16x128xf32> -> vector<16x128xf32>
    %c0_21 = arith.constant 0 : index
    %c0_22 = arith.constant 0 : index
    %33 = vector.load %arg9[%c0_21, %c0_22] : memref<1x128xf32, #tpu.memory_space<vmem>>, vector<1x128xf32>
    %34 = vector.broadcast %33 : vector<1x128xf32> to vector<16x128xf32>
    %35 = arith.addf %32, %34 : vector<16x128xf32>
    %36 = arith.mulf %35, %35 : vector<16x128xf32>
    %cst_23 = arith.constant dense<0.000000e+00> : vector<16xf32>
    %37 = vector.multi_reduction <add>, %36, %cst_23 [1] : vector<16x128xf32> to vector<16xf32>
    %38 = vector.shape_cast %37 : vector<16xf32> to vector<16x1xf32>
    %cst_24 = arith.constant 9.99999996E-13 : f32
    %39 = vector.broadcast %cst_24 : f32 to vector<16x1xf32>
    %40 = arith.addf %38, %39 : vector<16x1xf32>
    %41 = math.rsqrt %40 : vector<16x1xf32>
    %42 = vector.broadcast %41 : vector<16x1xf32> to vector<16x128xf32>
    %43 = arith.mulf %35, %42 : vector<16x128xf32>
    %44 = arith.truncf %43 : vector<16x128xf32> to vector<16x128xbf16>
    %c0_25 = arith.constant 0 : index
    %c0_26 = arith.constant 0 : index
    %45 = vector.load %arg10[%c0_25, %c0_26] : memref<16x128xbf16, #tpu.memory_space<vmem>>, vector<16x128xbf16>
    tpu.vector_store %arg10[%c0_25, %c0_26], %44 {strides = array<i32>} : memref<16x128xbf16, #tpu.memory_space<vmem>>, vector<16x128xbf16>,
    return
  }
  func.func @transform_0(%arg0: i32) -> (i32, i32) {
    %c0_i32 = arith.constant 0 : i32
    %c0_i32_0 = arith.constant 0 : i32
    return %arg0, %c0_i32 : i32, i32
  }
  func.func @transform_1(%arg0: i32) -> (i32, i32) {
    %c0_i32 = arith.constant 0 : i32
    %c0_i32_0 = arith.constant 0 : i32
    %c0_i32_1 = arith.constant 0 : i32
    return %c0_i32, %c0_i32_0 : i32, i32
  }
  func.func @transform_2(%arg0: i32) -> (i32, i32) {
    %c0_i32 = arith.constant 0 : i32
    %c0_i32_0 = arith.constant 0 : i32
    %c0_i32_1 = arith.constant 0 : i32
    return %c0_i32, %c0_i32_0 : i32, i32
  }
  func.func @transform_3(%arg0: i32) -> (i32, i32) {
    %c0_i32 = arith.constant 0 : i32
    %c0_i32_0 = arith.constant 0 : i32
    %c0_i32_1 = arith.constant 0 : i32
    return %c0_i32, %c0_i32_0 : i32, i32
  }
  func.func @transform_4(%arg0: i32) -> (i32, i32) {
    %c0_i32 = arith.constant 0 : i32
    %c0_i32_0 = arith.constant 0 : i32
    %c0_i32_1 = arith.constant 0 : i32
    return %c0_i32, %c0_i32_0 : i32, i32
  }
  func.func @transform_5(%arg0: i32) -> (i32, i32) {
    %c0_i32 = arith.constant 0 : i32
    %c0_i32_0 = arith.constant 0 : i32
    %c0_i32_1 = arith.constant 0 : i32
    return %c0_i32, %c0_i32_0 : i32, i32
  }
  func.func @transform_6(%arg0: i32) -> (i32, i32) {
    %c0_i32 = arith.constant 0 : i32
    %c0_i32_0 = arith.constant 0 : i32
    %c0_i32_1 = arith.constant 0 : i32
    return %c0_i32, %c0_i32_0 : i32, i32
  }
  func.func @transform_7(%arg0: i32) -> (i32, i32) {
    %c0_i32 = arith.constant 0 : i32
    %c0_i32_0 = arith.constant 0 : i32
    %c0_i32_1 = arith.constant 0 : i32
    return %c0_i32, %c0_i32_0 : i32, i32
  }
  func.func @transform_8(%arg0: i32) -> (i32, i32) {
    %c0_i32 = arith.constant 0 : i32
    %c0_i32_0 = arith.constant 0 : i32
    %c0_i32_1 = arith.constant 0 : i32
    return %c0_i32, %c0_i32_0 : i32, i32
  }
  func.func @transform_9(%arg0: i32) -> (i32, i32) {
    %c0_i32 = arith.constant 0 : i32
    %c0_i32_0 = arith.constant 0 : i32
    return %arg0, %c0_i32 : i32, i32
  }
}

</mosaic_0001>

<bundles_post_ra>
// kernel: tpu_custom_call.1
= control target key start
LH: loop header
LB: loop body
LE: loop exit
PB: predicated region body
PF: predicated region fallthrough
CT: control target
= control target key end

     0   :  { %14 = vsyncpa [#allocation3], 0  ;;  %s1128_s0 = inlined_call_operand.hbm [shape: bf16[16,64], index: 0, kind: input, shape index: {}]   ;;  %s1129_s1 = inlined_call_operand.hbm [shape: bf16[64,128], index: 1, kind: input, shape index: {}]   ;;  %s1130_s2 = inlined_call_operand.vmem [shape: f32[1,128], index: 2, kind: input, shape index: {}]   ;;  %s1131_s3 = inlined_call_operand.hbm [shape: bf16[128,128], index: 3, kind: input, shape index: {}]   ;;  %s1132_s4 = inlined_call_operand.vmem [shape: f32[1,128], index: 4, kind: input, shape index: {}]   ;;  %s1133_s5 = inlined_call_operand.hbm [shape: bf16[128,128], index: 5, kind: input, shape index: {}]   ;;  %s1134_s6 = inlined_call_operand.vmem [shape: f32[1,128], index: 6, kind: input, shape index: {}]   ;;  %s1135_s7 = inlined_call_operand.hbm [shape: bf16[128,128], index: 7, kind: input, shape index: {}]   ;;  %s1136_s8 = inlined_call_operand.vmem [shape: f32[1,128], index: 8, kind: input, shape index: {}]   ;;  %s1137_s9 = inlined_call_operand.hbm [shape: bf16[16,128], index: 9, kind: output, shape index: {}]  }
   0x1   :  { %15 = vsyncpa [#allocation6], 0 }
   0x2   :  { %16 = vsyncpa [#allocation9], 0 }
   0x3   :  { %17 = vsyncpa [#allocation4], 0  ;;  %s916_s30 = smov [#allocation5]   ;;  %s917_s11 = smov [#allocation8]  }
   0x4   :  { %s35_s10 = sshll.u32 %s916_s30, 4  ;;  %s63_s12 = sshll.u32 %s917_s11, 4  ;;  %s36_s10 = int_to_ptr.vmem [resolvable:$true] %s35_s10  ;;  %s976_s12 = int_to_ptr.vmem [resolvable:$true] %s63_s12 }
   0x5   :  { %s776_s15 = scalar_lea.hbm %s1129_s1, 512 }
   0x6   :  { %p777_p0 = scmp.ne.s32.totalorder %s1129_s1, %s776_s15  ;;  %p780_p1 = scmp.lt.u32.totalorder %s776_s15, %s1129_s1 }
   0x8   :  { %p782_p2 = pnand %p780_p1, %p777_p0 }
   0xa   :  { %785 = shalt.err (!%p782_p2)
}
   0xb   :  { %s786_s20 = scalar_lea.vmem %s36_s10, 512  ;;  %p791_p4 = scmp.lt.s32.totalorder %s36_s10, %s36_s10 }
   0xc   :  { %p787_p3 = scmp.ne.s32.totalorder %s36_s10, %s786_s20  ;;  %p792_p5 = scmp.lt.s32.totalorder %s786_s20, %s786_s20 }
   0xe   :  { %p793_p6 = por %p792_p5, %p791_p4 }
  0x10   :  { %p794_p7 = pnand %p793_p6, %p787_p3 }
  0x12   :  { %797 = shalt.err (!%p794_p7)
}
  0x13   :  { %s918_s21 = smov 64   ;;  %s919_s22 = smov 4  }
  0x14   :  { %41 = dma.hbm_to_vmem [thread:$0]  %s1129_s1, 512, %s36_s10, [#allocation6], %s918_s21, %s918_s21, %s919_s22  }
  0x15   :  { %s798_s27 = scalar_lea.hbm %s1133_s5, 1024 }
  0x16   :  { %p799_p8 = scmp.ne.s32.totalorder %s1133_s5, %s798_s27  ;;  %p802_p9 = scmp.lt.u32.totalorder %s798_s27, %s1133_s5 }
  0x18   :  { %p804_p10 = pnand %p802_p9, %p799_p8 }
  0x1a   :  { %807 = shalt.err (!%p804_p10)
}
  0x1b   :  { %s808_s13 = scalar_lea.vmem %s976_s12, 1024  ;;  %p813_p12 = scmp.lt.s32.totalorder %s976_s12, %s976_s12 }
  0x1c   :  { %p809_p11 = scmp.ne.s32.totalorder %s976_s12, %s808_s13  ;;  %p814_p13 = scmp.lt.s32.totalorder %s808_s13, %s808_s13 }
  0x1e   :  { %p815_p0 = por %p814_p13, %p813_p12 }
  0x20   :  { %p816_p1 = pnand %p815_p0, %p809_p11 }
  0x22   :  { %819 = shalt.err (!%p816_p1)
}
  0x23   :  { %69 = dma.hbm_to_vmem [thread:$0]  %s1133_s5, 1024, %s976_s12, [#allocation9], %s918_s21, %s918_s21, %s919_s22  }
  0x24   :  { %s920_s14 = smov [#allocation2]   ;;  %s921_s16 = smov [#allocation7]  }
  0x25   :  { %s23_s15 = sshll.u32 %s920_s14, 4  ;;  %s49_s17 = sshll.u32 %s921_s16, 4  ;;  %s24_s15 = int_to_ptr.vmem [resolvable:$true] %s23_s15  ;;  %s1013_s17 = int_to_ptr.vmem [resolvable:$true] %s49_s17 }
  0x26   :  { %s820_s20 = scalar_lea.hbm %s1128_s0, 128 }
  0x27   :  { %p821_p2 = scmp.ne.s32.totalorder %s1128_s0, %s820_s20  ;;  %p824_p3 = scmp.lt.u32.totalorder %s820_s20, %s1128_s0 }
  0x29   :  { %p826_p4 = pnand %p824_p3, %p821_p2 }
  0x2b   :  { %829 = shalt.err (!%p826_p4)
}
  0x2c   :  { %s830_s5 = scalar_lea.vmem %s24_s15, 128  ;;  %p835_p6 = scmp.lt.s32.totalorder %s24_s15, %s24_s15 }
  0x2d   :  { %p831_p5 = scmp.ne.s32.totalorder %s24_s15, %s830_s5  ;;  %p836_p7 = scmp.lt.s32.totalorder %s830_s5, %s830_s5 }
  0x2f   :  { %p837_p8 = por %p836_p7, %p835_p6 }
  0x31   :  { %p838_p9 = pnand %p837_p8, %p831_p5 }
  0x33   :  { %841 = shalt.err (!%p838_p9)
}
  0x34   :  { %29 = dma.hbm_to_vmem [thread:$0]  %s1128_s0, 128, %s24_s15, [#allocation3], %s918_s21, %s918_s21, %s919_s22  }
  0x35   :  { %s842_s30 = scalar_lea.hbm %s1131_s3, 1024 }
  0x36   :  { %p843_p10 = scmp.ne.s32.totalorder %s1131_s3, %s842_s30  ;;  %p846_p11 = scmp.lt.u32.totalorder %s842_s30, %s1131_s3 }
  0x38   :  { %p848_p12 = pnand %p846_p11, %p843_p10 }
  0x3a   :  { %851 = shalt.err (!%p848_p12)
}
  0x3b   :  { %s852_s14 = scalar_lea.vmem %s1013_s17, 1024  ;;  %p857_p0 = scmp.lt.s32.totalorder %s1013_s17, %s1013_s17 }
  0x3c   :  { %p853_p13 = scmp.ne.s32.totalorder %s1013_s17, %s852_s14  ;;  %p858_p1 = scmp.lt.s32.totalorder %s852_s14, %s852_s14 }
  0x3e   :  { %p859_p2 = por %p858_p1, %p857_p0 }
  0x40   :  { %p860_p3 = pnand %p859_p2, %p853_p13 }
  0x42   :  { %863 = shalt.err (!%p860_p3)
}
  0x43   :  { %55 = dma.hbm_to_vmem [thread:$0]  %s1131_s3, 1024, %s1013_s17, [#allocation6], %s918_s21, %s918_s21, %s919_s22  }
  0x44   :  { %s922_s16 = smov [#allocation10]   ;;  %s864_s23 = scalar_lea.hbm %s1135_s7, 1024 }
  0x45   :  { %s77_s18 = sshll.u32 %s922_s16, 4  ;;  %p865_p4 = scmp.ne.s32.totalorder %s1135_s7, %s864_s23  ;;  %s78_s18 = int_to_ptr.vmem [resolvable:$true] %s77_s18 }
  0x46   :  { %p868_p5 = scmp.lt.u32.totalorder %s864_s23, %s1135_s7 }
  0x48   :  { %p870_p6 = pnand %p868_p5, %p865_p4 }
  0x4a   :  { %873 = shalt.err (!%p870_p6)
}
  0x4b   :  { %s874_s12 = scalar_lea.vmem %s78_s18, 1024  ;;  %p879_p8 = scmp.lt.s32.totalorder %s78_s18, %s78_s18 }
  0x4c   :  { %p875_p7 = scmp.ne.s32.totalorder %s78_s18, %s874_s12  ;;  %p880_p9 = scmp.lt.s32.totalorder %s874_s12, %s874_s12 }
  0x4e   :  { %p881_p10 = por %p880_p9, %p879_p8 }
  0x50   :  { %p882_p11 = pnand %p881_p10, %p875_p7 }
  0x52   :  { %885 = shalt.err (!%p882_p11)
}
  0x53   :  { %83 = dma.hbm_to_vmem [thread:$0]  %s1135_s7, 1024, %s78_s18, [#allocation9], %s918_s21, %s918_s21, %s919_s22  }
  0x54   :  { %908 = dma.done.wait [#allocation3], 128  }
  0x55   :  { %909 = vsyncadd [#allocation3], 4294967168 }
  0x56   :  { %910 = dma.done.wait [#allocation6], 1536  }
  0x57   :  { %911 = vsyncadd [#allocation6], 4294965760 }
  0x58   :  { %912 = dma.done.wait [#allocation9], 2048  }
  0x59   :  { %913 = vsyncadd [#allocation9], 4294965248  ;;  %v923_v0 = vmov 0.0   ;;  %vm924_vm0 = vmmov 0   ;;  %v743_v1 = vld [vmem:[#allocation5] sm:$0xff]   ;;  %v744_v2 = vld [vmem:[#allocation5 + $0x8] sm:$0xff]   ;;  %v193_v19 = vlaneseq }
  0x5a   :  { %661 = vmatprep.subr.bf16.mxu0 %v923_v0  ;;  %669 = vmatprep.mubr.msk.bf16.mxu0 %vm924_vm0, %v923_v0  ;;  %v748_v3 = vld [vmem:[#allocation7] sm:$0xff]   ;;  %v745_v4 = vld [vmem:[#allocation5 + $0x10] sm:$0xff]   ;;  %v749_v5 = vld [vmem:[#allocation7 + $0x8] sm:$0xff]   ;;  %vm142_vm1 = vcmask 523264  }
  0x5b   :  { %673 = vmatprep.subr.bf16.mxu1 %v923_v0  ;;  %689 = vmatprep.mubr.msk.bf16.mxu1 %vm924_vm0, %v923_v0  ;;  %v746_v6 = vld [vmem:[#allocation5 + $0x18] sm:$0xff]   ;;  %v750_v7 = vld [vmem:[#allocation7 + $0x10] sm:$0xff]   ;;  %v752_v10 = vld [vmem:[#allocation7 + $0x20] sm:$0xff]   ;;  %v194_v22 = vshrl.u32 %v193_v19, 7 }
  0x5c   :  { %662 = vmatpush3.bf16.msra.mxu0 %v743_v1  ;;  %674 = vmatpush3.bf16.msra.mxu1 %v748_v3  ;;  %v747_v8 = vld [vmem:[#allocation2] sm:$0xff]   ;;  %v753_v11 = vld [vmem:[#allocation7 + $0x28] sm:$0xff]   ;;  %v754_v12 = vld [vmem:[#allocation7 + $0x30] sm:$0xff]  }
  0x5d   :  { %663 = vmatprep.subr.bf16.mxu0 %v923_v0  ;;  %675 = vmatprep.subr.bf16.mxu1 %v923_v0  ;;  %v751_v9 = vld [vmem:[#allocation7 + $0x18] sm:$0xff]   ;;  %v756_v14 = vld [vmem:[#allocation8] sm:$0xff]   ;;  %v757_v15 = vld [vmem:[#allocation8 + $0x8] sm:$0xff]   ;;  %v195_v24 = vsub.s32 0, %v194_v22 }
  0x5e   :  { %v755_v13 = vld [vmem:[#allocation7 + $0x38] sm:$0xff]   ;;  %v758_v16 = vld [vmem:[#allocation8 + $0x10] sm:$0xff]   ;;  %v760_v18 = vld [vmem:[#allocation8 + $0x20] sm:$0xff]  }
  0x5f   :  { %v759_v17 = vld [vmem:[#allocation8 + $0x18] sm:$0xff]   ;;  %v761_v34 = vld [vmem:[#allocation8 + $0x28] sm:$0xff]   ;;  %v762_v35 = vld [vmem:[#allocation8 + $0x30] sm:$0xff]  }
  0x60   :  { %664 = vmatpush3.bf16.msra.mxu0 %v744_v2  ;;  %676 = vmatpush3.bf16.msra.mxu1 %v749_v5  ;;  %v188_v20 = vld [vmem:[%s1130_s2] sm:$0x1]  ;;  %v764_v37 = vld [vmem:[#allocation10] sm:$0xff]   ;;  %v765_v38 = vld [vmem:[#allocation10 + $0x8] sm:$0xff]  }
  0x61   :  { %665 = vmatprep.subr.bf16.mxu0 %v923_v0  ;;  %677 = vmatprep.subr.bf16.mxu1 %v923_v0  ;;  %v189_v21 = vpack.c.bf16 %v188_v20, %v188_v20  ;;  %v763_v36 = vld [vmem:[#allocation8 + $0x38] sm:$0xff]   ;;  %v766_v39 = vld [vmem:[#allocation10 + $0x10] sm:$0xff]   ;;  %v768_v41 = vld [vmem:[#allocation10 + $0x20] sm:$0xff]  }
  0x62   :  { %v767_v40 = vld [vmem:[#allocation10 + $0x18] sm:$0xff]   ;;  %v769_v54 = vld [vmem:[#allocation10 + $0x28] sm:$0xff]   ;;  %v770_v55 = vld [vmem:[#allocation10 + $0x30] sm:$0xff]  }
  0x63   :  { %v191_v23 = vpack.i.b16 %v189_v21, %v189_v21  ;;  %v306_v42 = vld [vmem:[%s1132_s4] sm:$0x1] }
  0x64   :  { %666 = vmatpush3.bf16.msra.mxu0 %v745_v4  ;;  %678 = vmatpush3.bf16.msra.mxu1 %v750_v7  ;;  %v307_v43 = vpack.c.bf16 %v306_v42, %v306_v42  ;;  %v771_v56 = vld [vmem:[#allocation10 + $0x38] sm:$0xff]  }
  0x65   :  { %667 = vmatprep.subr.bf16.mxu0 %v923_v0  ;;  %679 = vmatprep.subr.bf16.mxu1 %v923_v0  ;;  %v196_v27 = vrot.slane %v191_v23, %v195_v24  ;;  %v424_v57 = vld [vmem:[%s1134_s6] sm:$0x1]  ;;  %s925_s6 = smov [#allocation11]  }
  0x66   :  { %v309_v44 = vpack.i.b16 %v307_v43, %v307_v43  ;;  %v425_v58 = vpack.c.bf16 %v424_v57, %v424_v57 }
  0x68   :  { %668 = vmatpush3.bf16.msra.mxu0 %v746_v6  ;;  %680 = vmatpush3.bf16.msra.mxu1 %v751_v9  ;;  %v314_v47 = vrot.slane %v309_v44, %v195_v24  ;;  %v427_v59 = vpack.i.b16 %v425_v58, %v425_v58 }
  0x69   :  { %693 = vmatprep.subr.bf16.mxu0 %v923_v0  ;;  %681 = vmatprep.subr.bf16.mxu1 %v923_v0 }
  0x6a   :  { %v432_v62 = vrot.slane %v427_v59, %v195_v24 }
  0x6b   :  { %670 = vmatmul.mubr.msk.bf16.vlgmr.msra.gmra.mrb[0].mxu0 %vm142_vm1, %v747_v8 }
  0x6c   :  { %709 = vmatprep.mubr.msk.bf16.mxu0 %vm924_vm0, %v923_v0  ;;  %682 = vmatpush3.bf16.msra.mxu1 %v752_v10 }
  0x6d   :  { %683 = vmatprep.subr.bf16.mxu1 %v923_v0  ;;  %694 = vmatpush3.bf16.msra.mxu0 %v756_v14 }
  0x6e   :  { %695 = vmatprep.subr.bf16.mxu0 %v923_v0 }
  0x70   :  { %684 = vmatpush3.bf16.msra.mxu1 %v753_v11 }
  0x71   :  { %685 = vmatprep.subr.bf16.mxu1 %v923_v0  ;;  %696 = vmatpush3.bf16.msra.mxu0 %v757_v15 }
  0x72   :  { %697 = vmatprep.subr.bf16.mxu0 %v923_v0 }
  0x74   :  { %686 = vmatpush3.bf16.msra.mxu1 %v754_v12 }
  0x75   :  { %687 = vmatprep.subr.bf16.mxu1 %v923_v0  ;;  %698 = vmatpush3.bf16.msra.mxu0 %v758_v16 }
  0x76   :  { %699 = vmatprep.subr.bf16.mxu0 %v923_v0 }
  0x78   :  { %688 = vmatpush3.bf16.msra.mxu1 %v755_v13 }
  0x79   :  { %713 = vmatprep.subr.bf16.mxu1 %v923_v0  ;;  %700 = vmatpush3.bf16.msra.mxu0 %v759_v17 }
  0x7a   :  { %701 = vmatprep.subr.bf16.mxu0 %v923_v0 }
  0x7d   :  { %702 = vmatpush3.bf16.msra.mxu0 %v760_v18 }
  0x7e   :  { %703 = vmatprep.subr.bf16.mxu0 %v923_v0 }
  0x81   :  { %704 = vmatpush3.bf16.msra.mxu0 %v761_v34 }
  0x82   :  { %705 = vmatprep.subr.bf16.mxu0 %v923_v0 }
  0x85   :  { %706 = vmatpush3.bf16.msra.mxu0 %v762_v35 }
  0x86   :  { %707 = vmatprep.subr.bf16.mxu0 %v923_v0 }
  0x89   :  { %708 = vmatpush3.bf16.msra.mxu0 %v763_v36 }
 0x13e   :  { %v180_v25 = vpop.f32.mrb[0].mxu0 }
 0x13f   :  { %v671_v26 = vpop.f32.mrb[1].mxu0 }
 0x140   :  { %v183_v28 = vpop.f32.mrb[2].mxu0 }
 0x141   :  { %v187_v29 = vpack.c.bf16 %v183_v28, %v180_v25  ;;  %v672_v30 = vpop.f32.mrb[3].mxu0 }
 0x143   :  { %v197_v31 = vadd.bf16 %v196_v27, %v187_v29 }
 0x145   :  { %v198_v32 = vmul.bf16 1036860877, %v197_v31 }
 0x147   :  { %v199_v33 = vmax.bf16 %v198_v32, %v197_v31 }
 0x149   :  { %690 = vmatmul.mubr.bf16.vlgmr.msra.gmra.mrb[0].mxu1 %v199_v33 }
 0x14a   :  { %729 = vmatprep.mubr.msk.bf16.mxu1 %vm924_vm0, %v923_v0  ;;  %714 = vmatpush3.bf16.msra.mxu1 %v764_v37 }
 0x14b   :  { %715 = vmatprep.subr.bf16.mxu1 %v923_v0 }
 0x14e   :  { %716 = vmatpush3.bf16.msra.mxu1 %v765_v38 }
 0x14f   :  { %717 = vmatprep.subr.bf16.mxu1 %v923_v0 }
 0x152   :  { %718 = vmatpush3.bf16.msra.mxu1 %v766_v39 }
 0x153   :  { %719 = vmatprep.subr.bf16.mxu1 %v923_v0 }
 0x156   :  { %720 = vmatpush3.bf16.msra.mxu1 %v767_v40 }
 0x157   :  { %721 = vmatprep.subr.bf16.mxu1 %v923_v0 }
 0x15a   :  { %722 = vmatpush3.bf16.msra.mxu1 %v768_v41 }
 0x15b   :  { %723 = vmatprep.subr.bf16.mxu1 %v923_v0 }
 0x15e   :  { %724 = vmatpush3.bf16.msra.mxu1 %v769_v54 }
 0x15f   :  { %725 = vmatprep.subr.bf16.mxu1 %v923_v0 }
 0x162   :  { %726 = vmatpush3.bf16.msra.mxu1 %v770_v55 }
 0x163   :  { %727 = vmatprep.subr.bf16.mxu1 %v923_v0  ;;  %v611_v0 = vld [vmem:[%s1136_s8] ss:$0 sm:$0xff]  ;;  %s575_s8 = sshll.u32 %s925_s6, 4  ;;  %s576_s8 = int_to_ptr.vmem [resolvable:$true] %s575_s8 }
 0x164   :  { %s886_s13 = scalar_lea.vmem %s576_s8, 128  ;;  %p891_p13 = scmp.lt.s32.totalorder %s576_s8, %s576_s8 }
 0x165   :  { %p887_p12 = scmp.ne.s32.totalorder %s576_s8, %s886_s13  ;;  %p892_p0 = scmp.lt.s32.totalorder %s886_s13, %s886_s13 }
 0x166   :  { %728 = vmatpush3.bf16.msra.mxu1 %v771_v56 }
 0x167   :  { %p893_p1 = por %p892_p0, %p891_p13 }
 0x169   :  { %p894_p2 = pnand %p893_p1, %p887_p12 }
 0x21c   :  { %v298_v45 = vpop.f32.mrb[0].mxu1 }
 0x21d   :  { %v691_v46 = vpop.f32.mrb[1].mxu1 }
 0x21e   :  { %v301_v48 = vpop.f32.mrb[2].mxu1 }
 0x21f   :  { %v305_v49 = vpack.c.bf16 %v301_v48, %v298_v45  ;;  %v692_v50 = vpop.f32.mrb[3].mxu1 }
 0x221   :  { %v315_v51 = vadd.bf16 %v314_v47, %v305_v49 }
 0x223   :  { %v316_v52 = vmul.bf16 1036860877, %v315_v51 }
 0x225   :  { %v317_v53 = vmax.bf16 %v316_v52, %v315_v51 }
 0x227   :  { %710 = vmatmul.mubr.bf16.vlgmr.msra.gmra.mrb[4].mxu0 %v317_v53 }
 0x2fa   :  { %v416_v60 = vpop.f32.mrb[4].mxu0 }
 0x2fb   :  { %v711_v61 = vpop.f32.mrb[5].mxu0 }
 0x2fc   :  { %v419_v63 = vpop.f32.mrb[6].mxu0 }
 0x2fd   :  { %v423_v1 = vpack.c.bf16 %v419_v63, %v416_v60  ;;  %v712_v2 = vpop.f32.mrb[7].mxu0 }
 0x2ff   :  { %v433_v3 = vadd.bf16 %v432_v62, %v423_v1 }
 0x301   :  { %v434_v4 = vmul.bf16 1036860877, %v433_v3 }
 0x303   :  { %v435_v5 = vmax.bf16 %v434_v4, %v433_v3 }
 0x305   :  { %730 = vmatmul.mubr.bf16.vlgmr.msra.gmra.mrb[4].mxu1 %v435_v5 }
 0x3d8   :  { %v541_v6 = vpop.f32.mrb[4].mxu1 }
 0x3d9   :  { %v542_v7 = vadd.f32 %v611_v0, %v541_v6  ;;  %v731_v8 = vpop.f32.mrb[5].mxu1 }
 0x3da   :  { %v544_v9 = vpop.f32.mrb[6].mxu1 }
 0x3db   :  { %v545_v10 = vadd.f32 %v611_v0, %v544_v9  ;;  %v732_v11 = vpop.f32.mrb[7].mxu1  ;;  %v548_v12 = vmul.f32 %v542_v7, %v542_v7 }
 0x3dd   :  { %550 = vadd.xlane.f32.xlu0 %v548_v12  ;;  %v549_v13 = vmul.f32 %v545_v10, %v545_v10 }
 0x3e1   :  { %552 = vadd.xlane.f32.xlu0 %v549_v13 }
 0x46a   :  { %v551_v14 = vpop.xlane.xlu0 %550 }
 0x46b   :  { %v554_v15 = vadd.f32 1e-12, %v551_v14 }
 0x46d   :  { %772 = vrsqrt.f32 %v554_v15 }
 0x46e   :  { %v553_v16 = vpop.xlane.xlu0 %552 }
 0x46f   :  { %v555_v17 = vadd.f32 1e-12, %v553_v16 }
 0x471   :  { %774 = vrsqrt.f32 %v555_v17 }
 0x477   :  { %v773_v18 = vpop.eup %772 }
 0x478   :  { %v558_v20 = vmul.f32 %v773_v18, %v542_v7 }
 0x47b   :  { %v775_v19 = vpop.eup %774 }
 0x47c   :  { %v559_v21 = vmul.f32 %v775_v19, %v545_v10 }
 0x47e   :  { %v627_v22 = vpack.c.bf16 %v559_v21, %v558_v20 }
 0x480   :  { %628 = vst [vmem:[#allocation11] sm:$0xff] %v627_v22  }
 0x481   :  { %897 = shalt.err (!%p894_p2)
}
 0x482   :  { %s898_s14 = scalar_lea.hbm %s1137_s9, 128 }
 0x483   :  { %p899_p3 = scmp.ne.s32.totalorder %s1137_s9, %s898_s14  ;;  %p902_p4 = scmp.lt.u32.totalorder %s898_s14, %s1137_s9 }
 0x485   :  { %p904_p5 = pnand %p902_p4, %p899_p3 }
 0x487   :  { %907 = shalt.err (!%p904_p5)
}
 0x488   :  { %581 = dma.vmem_to_hbm [thread:$0]  %s576_s8, 128, %s1137_s9, [#allocation4], %s918_s21, %s918_s21, %s919_s22  }
 0x489   :  { %914 = dma.done.wait [#allocation4], 128  }
 0x48a   :  { %915 = vsyncadd [#allocation4], 4294967168 }
 0x48b   :  { %585 = vsyncpa [#allocation3], 1 }
 0x48c   :  { %586 = vsyncpa [#allocation6], 1 }
 0x48d   :  { %587 = vsyncpa [#allocation9], 1 }
 0x48e   :  { %588 = vsyncpa [#allocation4], 1 }

</bundles_post_ra>
